<compile_context>
chip_gen: v5e
topology: v5e:2x2
jax: 0.10.0
libtpu: 0.0.40
codegen_flags: <defaults>
</compile_context>

<pallas_src>
import jax
import jax.numpy as jnp
from jax.experimental import pallas as pl
from jax.experimental.pallas import tpu as pltpu


# ---------------------------------------------------------------------------
# Kernels
# ---------------------------------------------------------------------------

def _lr_kernel_single(ac_ref, tok_ref, wa_ref, b_ref, out_ref):
    """output_dim == 1.  Pure VPU: broadcast-mul + lane reduce + exact sigmoid.

    ac_ref : (TB, S*A) f32   flattened acoustic features (lane-dense, unpadded)
    tok_ref: (TB, S)   f32   per-token pre-contracted text(+speaker) values
                             (embedding tables folded into W, 1/S already applied)
    wa_ref : (1, S*A)  f32   acoustic weight replicated over S with 1/S folded in
    b_ref  : (1,)      f32   bias, in SMEM
    out_ref: (TB, 1)   f32
    """
    x = ac_ref[...].astype(jnp.float32)
    acc = jnp.sum(x * wa_ref[...], axis=-1, keepdims=True)                  # (TB, 1)
    acc = acc + jnp.sum(tok_ref[...].astype(jnp.float32), axis=-1, keepdims=True)
    logits = acc + b_ref[0]
    out_ref[...] = (1.0 / (1.0 + jnp.exp(-logits))).astype(out_ref.dtype)   # exact divide


def _make_lr_kernel_multi(inv_s: float):
    """General output_dim > 1: pool over S first, then one (TB,A)@(A,O) matmul."""

    def kernel(ac_ref, tok_ref, wa_ref, b_ref, out_ref):
        ac = ac_ref[...].astype(jnp.float32)                 # (TB, S, A)
        pooled = jnp.sum(ac, axis=1) * inv_s                 # (TB, A)  sublane reduce
        # For O < ~128 a per-column VPU contraction would avoid MXU N-padding
        # (review item 6); kept as a single f32 dot for simplicity — this path is
        # never compute-relevant at this module's sizes.
        acc = jnp.dot(pooled, wa_ref[...], preferred_element_type=jnp.float32)  # (TB, O)
        acc = acc + jnp.sum(tok_ref[...].astype(jnp.float32), axis=1)            # (TB, O)
        logits = acc + b_ref[...].astype(jnp.float32)
        out_ref[...] = (1.0 / (1.0 + jnp.exp(-logits))).astype(out_ref.dtype)

    return kernel


# ---------------------------------------------------------------------------
# Tiling
# ---------------------------------------------------------------------------

def _pick_batch_tile(batch: int) -> int:
    """Largest 8-row-aligned tile under a ~1.5 MiB/block budget, with >= 2 grid
    blocks whenever the batch allows it (so ("parallel",) splits across v7x's two
    TensorCores).  Ragged last blocks are fine: rows are independent, OOB input
    rows are garbage that only feeds dropped OOB output rows."""
    CAP = 2048                       # ~0.7 KiB/row at S=8, D=64 -> well under 32 MiB VMEM
    if batch <= 8:
        return batch                 # single tiny full-dim block
    half = -(-batch // 2)
    half = -(-half // 8) * 8         # round up to the 8-sublane granule
    return min(CAP, half)


# ---------------------------------------------------------------------------
# One-time parameter transform (hoisted out of the forward)
# ---------------------------------------------------------------------------

def prepare_lr_params(emb_table, spk_table, linear_w, linear_b, *, audio_dim, seq_len):
    """Fold the embedding tables into the linear layer (valid because mean-pool and
    the linear are both linear maps):

        sigmoid(mean_s([a, E[t], K[k]]) @ W + b)
      = sigmoid(mean_s(a) @ Wa + mean_s((E @ Wt)[t]) + mean_s((K @ Wk)[k]) + b)

    so the per-call gathers ship output_dim floats/token instead of text_dim
    floats/token.  The O==1 acoustic weight is replicated over S (with 1/S) so the
    kernel's contraction runs on the flattened, lane-dense (B, S*A) layout.
    """
    A = audio_dim
    T = emb_table.shape[1]
    O = linear_w.shape[1]
    S = seq_len
    inv_s = 1.0 / S
    hi = jax.lax.Precision.HIGHEST   # one-time transform -> exact f32

    w_a = linear_w[:A].astype(jnp.float32)                 # (A, O)
    w_t = linear_w[A:A + T].astype(jnp.float32)            # (T, O)
    eff_text = jnp.dot(emb_table.astype(jnp.float32), w_t, precision=hi) * inv_s   # (V, O)

    eff_spk = None
    if spk_table is not None:
        w_k = linear_w[A + T:].astype(jnp.float32)         # (K, O)
        eff_spk = jnp.dot(spk_table.astype(jnp.float32), w_k, precision=hi) * inv_s

    if O == 1:
        wa_arg = (jnp.tile(w_a, (S, 1)) * inv_s).reshape(1, S * A)   # (1, S*A)
        eff_text = eff_text.reshape(-1)                               # (V,)
        eff_spk = eff_spk.reshape(-1) if eff_spk is not None else None
        bias_arg = linear_b.astype(jnp.float32).reshape(1)            # SMEM scalar
    else:
        wa_arg = w_a                                                  # (A, O)
        bias_arg = linear_b.astype(jnp.float32).reshape(1, O)

    return dict(wa=wa_arg, eff_text=eff_text, eff_spk=eff_spk, bias=bias_arg,
                audio_dim=A, output_dim=O, seq_len=S)


# ---------------------------------------------------------------------------
# Forward
# ---------------------------------------------------------------------------

def lr_baseline_forward(acoustic_input, text_input, params, speaker_input=None):
    """Pool + linear + sigmoid fused in one Pallas kernel; tiny per-token gathers
    of the pre-contracted tables stay in XLA (4 B/token)."""
    B, S, A = acoustic_input.shape
    assert S == params["seq_len"] and A == params["audio_dim"]
    O = params["output_dim"]
    single = (O == 1)

    # Per-token pre-contracted modality contributions (already include W and 1/S).
    tok = jnp.take(params["eff_text"], text_input, axis=0)          # (B,S) or (B,S,O)
    if speaker_input is not None:
        tok = tok + jnp.take(params["eff_spk"], speaker_input, axis=0)

    TB = _pick_batch_tile(B)
    grid = (pl.cdiv(B, TB),)

    if single:
        ac = acoustic_input.reshape(B, S * A)        # contiguous -> free metadata reshape
        in_specs = [
            pl.BlockSpec((TB, S * A), lambda i: (i, 0)),
            pl.BlockSpec((TB, S), lambda i: (i, 0)),
            pl.BlockSpec((1, S * A), lambda i: (0, 0)),             # resident weight row
            pl.BlockSpec(memory_space=pltpu.MemorySpace.SMEM),      # (1,) bias scalar
        ]
        kernel = _lr_kernel_single
    else:
        ac = acoustic_input
        in_specs = [
            pl.BlockSpec((TB, S, A), lambda i: (i, 0, 0)),
            pl.BlockSpec((TB, S, O), lambda i: (i, 0, 0)),
            pl.BlockSpec((A, O), lambda i: (0, 0)),
            pl.BlockSpec((1, O), lambda i: (0, 0)),
        ]
        kernel = _make_lr_kernel_multi(1.0 / S)

    out = pl.pallas_call(
        kernel,
        out_shape=jax.ShapeDtypeStruct((B, O), jnp.float32),
        grid=grid,
        in_specs=in_specs,
        out_specs=pl.BlockSpec((TB, O), lambda i: (i, 0)),
        compiler_params=pltpu.CompilerParams(dimension_semantics=("parallel",)),
    )(ac, tok, params["wa"], params["bias"])

    # torch .squeeze(dim=1): only squeezes when output_dim == 1.
    return jnp.squeeze(out, axis=1) if single else out


# ---------------------------------------------------------------------------
# Self-contained test
# ---------------------------------------------------------------------------

if __name__ == "__main__":
    # ---- "params" (deterministic synthetic init; no checkpoint load) ----
    text_dim = 32
    audio_dim = 20
    spkr_emb_dim = 12
    num_speakers = 5
    num_embeddings = 100
    padding_idx = 0
    output_dim = 1
    input_dim = text_dim + audio_dim + spkr_emb_dim      # 64

    B, S = 2, 8                                          # small shapes

    key = jax.random.PRNGKey(0)
    k_emb, k_spk, k_w, k_b, k_ac, k_txt, k_sid = jax.random.split(key, 7)

    # nn.Embedding init ~ N(0,1); padding_idx row zeroed
    emb_table = jax.random.normal(k_emb, (num_embeddings, text_dim), jnp.float32)
    emb_table = emb_table.at[padding_idx].set(0.0)
    spk_table = jax.random.normal(k_spk, (num_speakers, spkr_emb_dim), jnp.float32)

    # nn.Linear(input_dim, output_dim): U(-1/sqrt(in), 1/sqrt(in)); stored as (D, O)
    bound = 1.0 / (input_dim ** 0.5)
    linear_w = jax.random.uniform(k_w, (input_dim, output_dim), jnp.float32,
                                  minval=-bound, maxval=bound)
    linear_b = jax.random.uniform(k_b, (output_dim,), jnp.float32,
                                  minval=-bound, maxval=bound)

    # ---- example inputs ----
    acoustic_input = jax.random.normal(k_ac, (B, S, audio_dim), jnp.float32)
    text_input = jax.random.randint(k_txt, (B, S), 0, num_embeddings, jnp.int32)
    speaker_input = jax.random.randint(k_sid, (B, S), 0, num_speakers, jnp.int32)

    # One-time parameter transform, then a jitted forward (review: collapse dispatch).
    params = prepare_lr_params(emb_table, spk_table, linear_w, linear_b,
                               audio_dim=audio_dim, seq_len=S)
    fwd = jax.jit(lambda ac, ti, si: lr_baseline_forward(ac, ti, params, speaker_input=si))

    out = jax.block_until_ready(fwd(acoustic_input, text_input, speaker_input))

    # ---- reference in plain JAX (matches the PyTorch forward) ----
    def reference(ac, ti, si):
        embs = jnp.take(emb_table, ti, axis=0)
        spk = jnp.take(spk_table, si, axis=0)
        feats = jnp.concatenate([ac, embs, spk], axis=2)
        logits = jnp.dot(jnp.mean(feats, axis=1), linear_w,
                         precision=jax.lax.Precision.HIGHEST) + linear_b
        return jax.nn.sigmoid(logits).squeeze(axis=1)

    ref = reference(acoustic_input, text_input, speaker_input)
    assert out.shape == (B,), out.shape
    assert jnp.allclose(out, ref, atol=1e-4), (out, ref)

    # ---- second check: multi-block grid with a ragged last tile (B=20, TB=16) ----
    B2 = 20
    k_ac2, k_txt2, k_sid2 = jax.random.split(jax.random.PRNGKey(1), 3)
    ac2 = jax.random.normal(k_ac2, (B2, S, audio_dim), jnp.float32)
    ti2 = jax.random.randint(k_txt2, (B2, S), 0, num_embeddings, jnp.int32)
    si2 = jax.random.randint(k_sid2, (B2, S), 0, num_speakers, jnp.int32)
    out2 = jax.block_until_ready(
        lr_baseline_forward(ac2, ti2, params, speaker_input=si2))
    ref2 = reference(ac2, ti2, si2)
    assert out2.shape == (B2,), out2.shape
    assert jnp.allclose(out2, ref2, atol=1e-4), (out2, ref2)

    print("KERNEL_OK")
</pallas_src>

<mosaic_0001>
module attributes {stable_mosaic.version = 11 : i64} {
  func.func @_lr_kernel_single(%arg0: i32, %arg1: memref<2x160xf32, #tpu.memory_space<vmem>>, %arg2: memref<2x8xf32, #tpu.memory_space<vmem>>, %arg3: memref<1x160xf32, #tpu.memory_space<vmem>>, %arg4: memref<1xf32, #tpu.memory_space<smem>>, %arg5: memref<2x1xf32, #tpu.memory_space<vmem>>) attributes {dimension_semantics = [#tpu.dimension_semantics<parallel>], iteration_bounds = array<i64: 1>, scalar_prefetch = 0 : i64, scratch_operands = 0 : i64, tpu.core_type = #tpu.core_type<tc>, window_params = [{transform_indices = @transform_0, window_bounds = array<i64: 2, 160>}, {transform_indices = @transform_1, window_bounds = array<i64: 2, 8>}, {pipeline_mode = #tpu.pipeline_mode<synchronous>, transform_indices = @transform_2, window_bounds = array<i64: 1, 160>}, {transform_indices = @transform_3, window_bounds = array<i64: 1>}, {transform_indices = @transform_4, window_bounds = array<i64: 2, 1>}]} {
    %c0 = arith.constant 0 : index
    %c0_0 = arith.constant 0 : index
    %0 = vector.load %arg1[%c0, %c0_0] : memref<2x160xf32, #tpu.memory_space<vmem>>, vector<2x160xf32>
    %c0_1 = arith.constant 0 : index
    %c0_2 = arith.constant 0 : index
    %1 = vector.load %arg3[%c0_1, %c0_2] : memref<1x160xf32, #tpu.memory_space<vmem>>, vector<1x160xf32>
    %2 = vector.broadcast %1 : vector<1x160xf32> to vector<2x160xf32>
    %3 = arith.mulf %0, %2 : vector<2x160xf32>
    %cst = arith.constant dense<0.000000e+00> : vector<2xf32>
    %4 = vector.multi_reduction <add>, %3, %cst [1] : vector<2x160xf32> to vector<2xf32>
    %5 = vector.shape_cast %4 : vector<2xf32> to vector<2x1xf32>
    %c0_3 = arith.constant 0 : index
    %c0_4 = arith.constant 0 : index
    %6 = vector.load %arg2[%c0_3, %c0_4] : memref<2x8xf32, #tpu.memory_space<vmem>>, vector<2x8xf32>
    %cst_5 = arith.constant dense<0.000000e+00> : vector<2xf32>
    %7 = vector.multi_reduction <add>, %6, %cst_5 [1] : vector<2x8xf32> to vector<2xf32>
    %8 = vector.shape_cast %7 : vector<2xf32> to vector<2x1xf32>
    %9 = arith.addf %5, %8 : vector<2x1xf32>
    %c0_6 = arith.constant 0 : index
    %10 = memref.load %arg4[%c0_6] : memref<1xf32, #tpu.memory_space<smem>>
    %11 = vector.broadcast %10 : f32 to vector<2x1xf32>
    %12 = arith.addf %9, %11 : vector<2x1xf32>
    %cst_7 = arith.constant 0.000000e+00 : f32
    %13 = vector.broadcast %cst_7 : f32 to vector<2x1xf32>
    %14 = arith.subf %13, %12 : vector<2x1xf32>
    %15 = math.exp %14 : vector<2x1xf32>
    %cst_8 = arith.constant 1.000000e+00 : f32
    %16 = vector.broadcast %cst_8 : f32 to vector<2x1xf32>
    %17 = arith.addf %16, %15 : vector<2x1xf32>
    %cst_9 = arith.constant 1.000000e+00 : f32
    %18 = vector.broadcast %cst_9 : f32 to vector<2x1xf32>
    %19 = arith.divf %18, %17 : vector<2x1xf32>
    %c0_10 = arith.constant 0 : index
    %c0_11 = arith.constant 0 : index
    %20 = vector.load %arg5[%c0_10, %c0_11] : memref<2x1xf32, #tpu.memory_space<vmem>>, vector<2x1xf32>
    tpu.vector_store %arg5[%c0_10, %c0_11], %19 {strides = array<i32>} : memref<2x1xf32, #tpu.memory_space<vmem>>, vector<2x1xf32>,
    return
  }
  func.func @transform_0(%arg0: i32) -> (i32, i32) {
    %c0_i32 = arith.constant 0 : i32
    %c0_i32_0 = arith.constant 0 : i32
    return %arg0, %c0_i32 : i32, i32
  }
  func.func @transform_1(%arg0: i32) -> (i32, i32) {
    %c0_i32 = arith.constant 0 : i32
    %c0_i32_0 = arith.constant 0 : i32
    return %arg0, %c0_i32 : i32, i32
  }
  func.func @transform_2(%arg0: i32) -> (i32, i32) {
    %c0_i32 = arith.constant 0 : i32
    %c0_i32_0 = arith.constant 0 : i32
    %c0_i32_1 = arith.constant 0 : i32
    return %c0_i32, %c0_i32_0 : i32, i32
  }
  func.func @transform_3(%arg0: i32) -> i32 {
    %c0_i32 = arith.constant 0 : i32
    %c0_i32_0 = arith.constant 0 : i32
    return %c0_i32 : i32
  }
  func.func @transform_4(%arg0: i32) -> (i32, i32) {
    %c0_i32 = arith.constant 0 : i32
    %c0_i32_0 = arith.constant 0 : i32
    return %arg0, %c0_i32 : i32, i32
  }
}

</mosaic_0001>

<bundles_post_ra>
// kernel: _lambda_.1
= control target key start
LH: loop header
LB: loop body
LE: loop exit
PB: predicated region body
PF: predicated region fallthrough
CT: control target
= control target key end

     0   :  { %vm24_vm0 = vcmask 1041408   ;;  %vm35_vm1 = vcmask 254976   ;;  %vm41_vm2 = vcmask 58368   ;;  %vm68_vm5 = vcmask 1024   ;;  %s118_s2 = inlined_call_operand.vmem [shape: f32[1,160], index: 2, kind: input, shape index: {}]   ;;  %s119_s0 = inlined_call_operand.vmem [shape: f32[2,160], index: 0, kind: input, shape index: {}]   ;;  %s120_s1 = inlined_call_operand.vmem [shape: f32[2,8], index: 1, kind: input, shape index: {}]   ;;  %s121_s3 = inlined_call_operand.<no memory space> [shape: f32[1], index: 3, kind: input, shape index: {}]   ;;  %s122_s4 = inlined_call_operand.vmem [shape: f32[2,1], index: 4, kind: output, shape index: {}]  }
   0x1   :  { %v19_v0 = vld [vmem:[%s118_s2] sm:$0x3]  ;;  %v47_v15 = vstv %s121_s3 }
   0x2   :  { %v21_v1 = vperm.slane %v19_v0, 0  ;;  %v22_v2 = vperm.slane %v19_v0, 1  ;;  %v18_v3 = vld [vmem:[%s119_s0] sm:$0xf] }
   0x3   :  { %v40_v12 = vld [vmem:[%s120_s1] sm:$0x3] }
   0x4   :  { %v23_v4 = vrot.slane %v22_v2, 6  ;;  %v42_v13 = vsel %vm41_vm2, %v40_v12, 0.0 }
   0x6   :  { %v25_v5 = vsel %vm24_vm0, %v21_v1, %v23_v4 }
   0x7   :  { %v27_v6 = vmul.f32 %v25_v5, %v18_v3 }
   0x9   :  { %29 = vst [vmem:[#allocation1] ss:$4 sm:$0xff] %v27_v6 }
  0x10   :  { %v30_v7 = vld.sshfl [vmem:[#allocation1] sm:$0xff pattern:$0x73625140]  ;;  %v31_v8 = vld.sshfl [vmem:[#allocation1 + $0x8] sm:$0xff pattern:$0x73625140] }
  0x11   :  { %v34_v9 = vsel %vm24_vm0, %v30_v7, 0.0  ;;  %v36_v10 = vsel %vm35_vm1, %v31_v8, 0.0 }
  0x12   :  { %v37_v11 = vadd.f32 %v36_v10, %v34_v9 }
  0x14   :  { %38 = vadd.xlane.f32.xlu0 %v37_v11 }
  0x1c   :  { %43 = vadd.xlane.f32.xlu0 %v42_v13 }
  0x87   :  { %v39_v14 = vpop.xlane.xlu0 %38 }
  0x8f   :  { %v44_v16 = vpop.xlane.xlu0 %43 }
  0x90   :  { %v45_v17 = vadd.f32 %v44_v16, %v39_v14 }
  0x92   :  { %v48_v18 = vadd.f32 %v47_v15, %v45_v17 }
  0x94   :  { %v49_v19 = vsub.f32 0.0, %v48_v18 }
  0x96   :  { %v50_v20 = vmul.f32 1.442695, %v49_v19 }
  0x98   :  { %74 = vpow2.f32 %v50_v20 }
  0x9e   :  { %v75_v21 = vpop.eup %74 }
  0x9f   :  { %v52_v22 = vadd.f32 1.0, %v75_v21 }
  0xa1   :  { %76 = vrcp.f32 %v52_v22  ;;  %v64_v26 = vand.u32 2147483648, %v52_v22  ;;  %v62_v28 = vand.u32 2147483647, %v52_v22  ;;  %vm58_vm4 = vweird.f32 %v52_v22 }
  0xa3   :  { %v65_v30 = vor.u32 1.1754944e-38, %v64_v26  ;;  %vm63_vm7 = vcmp.eq.f32.partialorder %v62_v28, 8.507059e+37 }
  0xa7   :  { %v77_v23 = vpop.eup %76 }
  0xa8   :  { %v54_v24 = vmul.f32 %v77_v23, %v52_v22  ;;  %vm59_vm3 = vweird.f32 %v77_v23 }
  0xa9   :  { %vm60_vm6 = vmor %vm58_vm4, %vm59_vm3 }
  0xaa   :  { %v55_v25 = vsub.f32 1.0, %v54_v24 }
  0xac   :  { %v56_v27 = vmul.f32 %v77_v23, %v55_v25 }
  0xae   :  { %v57_v29 = vadd.f32 %v77_v23, %v56_v27 }
  0xb0   :  { %v61_v31 = vsel %vm60_vm6, %v77_v23, %v57_v29 }
  0xb1   :  { %v66_v32 = vsel %vm63_vm7, %v65_v30, %v61_v31 }
  0xb2   :  { %69 = vst.msk [vmem:[%s122_s4] sm:$0x3] %vm68_vm5, %v66_v32 }

</bundles_post_ra>
